<compile_context>
chip_gen: v7x
topology: tpu7x:2x2x1
jax: 0.10.0
libtpu: 0.0.40
codegen_flags: <defaults>
</compile_context>

<pallas_src>
import functools

import jax
import jax.numpy as jnp
from jax.experimental import pallas as pl
from jax.experimental.pallas import tpu as pltpu


def _pair(v):
    return (v, v) if isinstance(v, int) else (int(v[0]), int(v[1]))


def _round_up(x, m):
    return ((x + m - 1) // m) * m


def _vmem_budgets():
    """Generation-aware VMEM sizing: bigger per-step blocks on 128 MiB v5e/v6e,
    capped on 64 MiB v7x.  Returns (per-step block budget, scoped vmem limit)."""
    cap = None
    try:
        info = pltpu.get_tpu_info()
        for name in ("vmem_capacity_bytes", "vmem_size_bytes", "vmem_bytes"):
            cap = getattr(info, name, None)
            if cap:
                break
    except Exception:
        cap = None
    if not cap:
        cap = 64 * 1024 * 1024                      # conservative: v7x-sized VMEM
    block_budget = min((3 * cap) // 8, 48 * 1024 * 1024)   # 48 MiB on v5e/v6e, 24 MiB on v7x
    vmem_limit = min((3 * cap) // 4, 96 * 1024 * 1024)     # 96 MiB on v5e/v6e, 48 MiB on v7x
    return block_budget, vmem_limit


def _choose_channel_tile(C, per_channel_bytes, budget_bytes, dtype):
    """Largest channel tile under the VMEM budget, rounded to the sublane quantum
    of `dtype` (8 for f32, 16 for bf16, 32 for int8/fp8).  Non-divisor tiles are
    fine: the grid uses pl.cdiv and Pallas masks the ragged last block."""
    itemsize = max(1, jnp.dtype(dtype).itemsize)
    quantum = 8 * max(1, 4 // itemsize)
    max_tc = max(1, int(budget_bytes // max(int(per_channel_bytes), 1)))
    if C <= max_tc:
        return C
    tc = (max_tc // quantum) * quantum
    if tc == 0:
        # TODO(synk): sub-quantum tile (huge H*W); slight budget overshoot but
        # keeps the block sublane-aligned.
        tc = min(C, quantum)
    return tc


# ----------------------------------------------------------------------------
# Fast path: stride (1, 1) and out_h == H, out_w == W  (the CTPN configuration).
# ----------------------------------------------------------------------------
def _im2col_same_kernel(col_ref, x_ref, o_ref, *, H, W, kh, kw, ph, pw):
    # col_ref: (1, N) int32, col[0, n] = n % W   (flat index -> column within row)
    # x_ref:   (1, TC, N)       spatially flattened input tile, N = H*W (lane-dense)
    # o_ref:   (1, TC, kh*kw*N) one contiguous lane-dense (TC, N) slab per offset
    N = H * W
    TC = x_ref.shape[1]
    dtype = x_ref.dtype
    zero = jnp.zeros((), dtype)

    # TODO(synk): if production H*W is not a multiple of 128, pad N up to a
    # 128-multiple in the wrapper so the slab stores stay lane-aligned.
    for i in range(kh):
        di = i - ph
        for j in range(kw):
            dj = j - pw
            s = di * W + dj                 # static flat shift, |s| <= ph*W + pw
            base = (i * kw + j) * N         # lane offset of this offset's slab
            cnt = N - abs(s)                # flat positions whose source row exists
            src = max(s, 0)                 # first source flat index
            dst = max(-s, 0)                # first destination flat index in slab

            # One shifted lane-slice read per offset (no padded scratch, no copy).
            val = x_ref[0, :, pl.ds(src, cnt)]               # (TC, cnt)

            # Column-wrap mask: (1, cnt), broadcast over channel sublanes for free.
            if dj > 0:
                cm = col_ref[:, pl.ds(dst, cnt)] < (W - dj)
                val = jnp.where(cm, val, zero)
            elif dj < 0:
                cm = col_ref[:, pl.ds(dst, cnt)] >= (-dj)
                val = jnp.where(cm, val, zero)

            # Lane-dense slab store for kernel offset (i, j).
            o_ref[0, :, pl.ds(base + dst, cnt)] = val
            # Rows shifted outside the image are zero padding: fill the slab ends.
            if dst > 0:
                o_ref[0, :, pl.ds(base, dst)] = jnp.zeros((TC, dst), dtype)
            if s > 0:
                o_ref[0, :, pl.ds(base + cnt, s)] = jnp.zeros((TC, s), dtype)


def _im2col_same_pallas(x, kh, kw, ph, pw):
    B, C, H, W = x.shape
    N = H * W
    KK = kh * kw
    ds_ = jnp.dtype(x.dtype).itemsize
    budget, limit = _vmem_budgets()

    # Per-channel VMEM: double-buffered input block + double-buffered output block
    # + slack for live intermediates.
    per_c = ds_ * N * (2 + 2 * KK + 2)
    TC = _choose_channel_tile(C, per_c, budget, x.dtype)
    nct = pl.cdiv(C, TC)

    xf = x.reshape(B, C, N)                                      # contiguous => free
    col = (jnp.arange(N, dtype=jnp.int32) % W).reshape(1, N)     # tiny (1, N) helper

    kern = functools.partial(
        _im2col_same_kernel, H=H, W=W, kh=kh, kw=kw, ph=ph, pw=pw
    )
    bytes_accessed = B * C * N * ds_ * (1 + KK) + 4 * N
    out = pl.pallas_call(
        kern,
        out_shape=jax.ShapeDtypeStruct((B, C, KK * N), x.dtype),
        grid=(B, nct),
        in_specs=[
            pl.BlockSpec((1, N), lambda b, c: (0, 0)),
            pl.BlockSpec((1, TC, N), lambda b, c: (b, c, 0)),
        ],
        out_specs=pl.BlockSpec((1, TC, KK * N), lambda b, c: (b, c, 0)),
        compiler_params=pltpu.CompilerParams(
            dimension_semantics=("parallel", "parallel"),
            vmem_limit_bytes=limit,
        ),
        cost_estimate=pl.CostEstimate(
            flops=0, transcendentals=0, bytes_accessed=bytes_accessed
        ),
    )(col, xf)
    # (B, C, kh*kw*N) -> (B, C*kh*kw, N): contiguous, free.
    return out.reshape(B, C * KK, N)


# ----------------------------------------------------------------------------
# General path: stride 1, arbitrary (non-"same") zero padding.  Rare for CTPN.
# ----------------------------------------------------------------------------
def _im2col_general_kernel(x_ref, o_ref, *, kh, kw, out_h, out_w):
    # x_ref: (1, TC, Hp, Wp) zero-padded input tile
    # o_ref: (1, TC, kh*kw, out_h, out_w)
    for i in range(kh):
        for j in range(kw):
            o_ref[0, :, i * kw + j, :, :] = x_ref[0, :, pl.ds(i, out_h),
                                                  pl.ds(j, out_w)]


def _im2col_general_pallas(x, kh, kw, ph, pw):
    B, C, H, W = x.shape
    Hp, Wp = H + 2 * ph, W + 2 * pw
    oh, ow = Hp - kh + 1, Wp - kw + 1
    KK = kh * kw
    ds_ = jnp.dtype(x.dtype).itemsize
    budget, limit = _vmem_budgets()

    per_c = ds_ * 2 * (
        _round_up(Hp, 8) * _round_up(Wp, 128)
        + KK * _round_up(oh, 8) * _round_up(ow, 128)
    )
    TC = _choose_channel_tile(C, per_c, budget, x.dtype)
    nct = pl.cdiv(C, TC)

    # TODO(synk): zero padding done as a separate XLA pad (one extra HBM pass);
    # folding it into the kernel (as the fast path does) would remove it.
    xpad = jnp.pad(x, ((0, 0), (0, 0), (ph, ph), (pw, pw)))
    kern = functools.partial(
        _im2col_general_kernel, kh=kh, kw=kw, out_h=oh, out_w=ow
    )
    bytes_accessed = (B * C * Hp * Wp + B * C * KK * oh * ow) * ds_
    patches = pl.pallas_call(
        kern,
        out_shape=jax.ShapeDtypeStruct((B, C, KK, oh, ow), x.dtype),
        grid=(B, nct),
        in_specs=[pl.BlockSpec((1, TC, Hp, Wp), lambda b, c: (b, c, 0, 0))],
        out_specs=pl.BlockSpec((1, TC, KK, oh, ow), lambda b, c: (b, c, 0, 0, 0)),
        compiler_params=pltpu.CompilerParams(
            dimension_semantics=("parallel", "parallel"),
            vmem_limit_bytes=limit,
        ),
        cost_estimate=pl.CostEstimate(
            flops=0, transcendentals=0, bytes_accessed=bytes_accessed
        ),
    )(xpad)
    # TODO(synk): out_w < 128 makes these stores lane-sparse (masked vst); a
    # lane-dense flat-slab layout like the fast path needs an in-kernel
    # (out_h, out_w) -> (out_h*out_w) relayout and is left out of this rare path.
    return patches.reshape(B, C * KK, oh * ow)


# ----------------------------------------------------------------------------
# Public entry point (matches Im2col.forward semantics for NCHW input).
# ----------------------------------------------------------------------------
def im2col(x, kernel_size=(3, 3), stride=(1, 1), padding=(1, 1)):
    kh, kw = _pair(kernel_size)
    sh, sw = _pair(stride)
    ph, pw = _pair(padding)
    B, C, H, W = x.shape
    KK = kh * kw

    oh1 = H + 2 * ph - kh + 1            # stride-1 unfold extents
    ow1 = W + 2 * pw - kw + 1
    out_h = (H + 2 * ph - kh) // sh + 1
    out_w = (W + 2 * pw - kw) // sw + 1

    if oh1 == H and ow1 == W:
        # "Same" configuration (CTPN: 3x3 / pad 1 / stride 1) -> lane-dense fast path.
        cols = _im2col_same_pallas(x, kh, kw, ph, pw).reshape(B, C * KK, H, W)
    else:
        cols = _im2col_general_pallas(x, kh, kw, ph, pw).reshape(B, C * KK, oh1, ow1)

    if sh > 1 or sw > 1:
        # TODO(synk): stride > 1 handled by subsampling the stride-1 unfold in
        # plain XLA (keeps the kernels free of strided lane reads); folding the
        # stride into the kernel index math would skip the dropped columns.
        cols = cols[:, :, ::sh, ::sw]

    cols = cols.reshape(B, C * KK, out_h * out_w)
    # F.unfold gives (B, C*kh*kw, L); the module reshapes with H = input height.
    return cols.reshape(B, C * KK, H, -1)


def _im2col_ref(x, kernel_size, stride, padding):
    """Pure-JAX reference (matches F.unfold + the module reshape)."""
    kh, kw = _pair(kernel_size)
    sh, sw = _pair(stride)
    ph, pw = _pair(padding)
    B, C, H, W = x.shape
    out_h = (H + 2 * ph - kh) // sh + 1
    out_w = (W + 2 * pw - kw) // sw + 1
    xpad = jnp.pad(x, ((0, 0), (0, 0), (ph, ph), (pw, pw)))
    pieces = []
    for i in range(kh):
        for j in range(kw):
            pieces.append(
                xpad[:, :, i: i + (out_h - 1) * sh + 1: sh,
                           j: j + (out_w - 1) * sw + 1: sw]
            )
    p = jnp.stack(pieces, axis=2)                      # (B, C, kh*kw, out_h, out_w)
    p = p.reshape(B, C * kh * kw, out_h * out_w)
    return p.reshape(B, C * kh * kw, H, -1)


if __name__ == "__main__":
    key = jax.random.PRNGKey(0)
    x = jax.random.normal(key, (2, 4, 16, 16), dtype=jnp.float32)

    # CTPN configuration: Im2col((3, 3), (1, 1), (1, 1)) -> lane-dense fast path.
    y = jax.block_until_ready(im2col(x, (3, 3), (1, 1), (1, 1)))
    y_ref = _im2col_ref(x, (3, 3), (1, 1), (1, 1))
    assert y.shape == (2, 4 * 9, 16, 16), y.shape
    assert bool(jnp.array_equal(y, y_ref)), "fast-path mismatch vs reference"

    # Asymmetric padding -> out_w != W -> general (gather) path.
    y2 = jax.block_until_ready(im2col(x, (3, 3), (1, 1), (1, 0)))
    y2_ref = _im2col_ref(x, (3, 3), (1, 1), (1, 0))
    assert y2.shape == y2_ref.shape, (y2.shape, y2_ref.shape)
    assert bool(jnp.array_equal(y2, y2_ref)), "general-path mismatch vs reference"

    # Stride 2 -> fast kernel + wrapper-side subsampling (no strided lane reads).
    y3 = jax.block_until_ready(im2col(x, (3, 3), (2, 2), (1, 1)))
    y3_ref = _im2col_ref(x, (3, 3), (2, 2), (1, 1))
    assert y3.shape == y3_ref.shape, (y3.shape, y3_ref.shape)
    assert bool(jnp.array_equal(y3, y3_ref)), "strided-path mismatch vs reference"

    print("KERNEL_OK")
</pallas_src>

<mosaic_0001>
module attributes {stable_mosaic.version = 11 : i64} {
  func.func @_im2col_same_kernel(%arg0: i32, %arg1: i32, %arg2: memref<1x256xi32, #tpu.memory_space<vmem>>, %arg3: memref<1x4x256xf32, #tpu.memory_space<vmem>>, %arg4: memref<1x4x2304xf32, #tpu.memory_space<vmem>>) attributes {dimension_semantics = [#tpu.dimension_semantics<parallel>, #tpu.dimension_semantics<parallel>], iteration_bounds = array<i64: 2, 1>, scalar_prefetch = 0 : i64, scratch_operands = 0 : i64, tpu.core_type = #tpu.core_type<tc>, window_params = [{pipeline_mode = #tpu.pipeline_mode<synchronous>, transform_indices = @transform_0, window_bounds = array<i64: 1, 256>}, {transform_indices = @transform_1, window_bounds = array<i64: 1, 4, 256>}, {transform_indices = @transform_2, window_bounds = array<i64: 1, 4, 2304>}]} {
    %c0 = arith.constant 0 : index
    %c0_0 = arith.constant 0 : index
    %c0_1 = arith.constant 0 : index
    %0 = vector.load %arg3[%c0, %c0_0, %c0_1] : memref<1x4x256xf32, #tpu.memory_space<vmem>>, vector<1x4x239xf32>
    %1 = vector.shape_cast %0 : vector<1x4x239xf32> to vector<4x239xf32>
    %c0_2 = arith.constant 0 : index
    %c17 = arith.constant 17 : index
    %2 = vector.load %arg2[%c0_2, %c17] : memref<1x256xi32, #tpu.memory_space<vmem>>, vector<1x239xi32>
    %c1_i32 = arith.constant 1 : i32
    %3 = vector.broadcast %c1_i32 : i32 to vector<1x239xi32>
    %4 = arith.cmpi sge, %2, %3 : vector<1x239xi32>
    %cst = arith.constant 0.000000e+00 : f32
    %5 = vector.shape_cast %4 : vector<1x239xi1> to vector<1x239xi1>
    %6 = vector.broadcast %5 : vector<1x239xi1> to vector<4x239xi1>
    %7 = vector.broadcast %cst : f32 to vector<4x239xf32>
    %8 = arith.select %6, %1, %7 : vector<4x239xi1>, vector<4x239xf32>
    %c0_3 = arith.constant 0 : index
    %c0_4 = arith.constant 0 : index
    %c17_5 = arith.constant 17 : index
    %9 = vector.load %arg4[%c0_3, %c0_4, %c17_5] : memref<1x4x2304xf32, #tpu.memory_space<vmem>>, vector<1x4x239xf32>
    %10 = vector.shape_cast %9 : vector<1x4x239xf32> to vector<4x239xf32>
    %11 = vector.shape_cast %8 : vector<4x239xf32> to vector<1x4x239xf32>
    tpu.vector_store %arg4[%c0_3, %c0_4, %c17_5], %11 {strides = array<i32>} : memref<1x4x2304xf32, #tpu.memory_space<vmem>>, vector<1x4x239xf32>,
    %cst_6 = arith.constant 0.000000e+00 : f32
    %12 = vector.broadcast %cst_6 : f32 to vector<4x17xf32>
    %c0_7 = arith.constant 0 : index
    %c0_8 = arith.constant 0 : index
    %c0_9 = arith.constant 0 : index
    %13 = vector.load %arg4[%c0_7, %c0_8, %c0_9] : memref<1x4x2304xf32, #tpu.memory_space<vmem>>, vector<1x4x17xf32>
    %14 = vector.shape_cast %13 : vector<1x4x17xf32> to vector<4x17xf32>
    %15 = vector.shape_cast %12 : vector<4x17xf32> to vector<1x4x17xf32>
    tpu.vector_store %arg4[%c0_7, %c0_8, %c0_9], %15 {strides = array<i32>} : memref<1x4x2304xf32, #tpu.memory_space<vmem>>, vector<1x4x17xf32>,
    %c0_10 = arith.constant 0 : index
    %c0_11 = arith.constant 0 : index
    %c0_12 = arith.constant 0 : index
    %16 = vector.load %arg3[%c0_10, %c0_11, %c0_12] : memref<1x4x256xf32, #tpu.memory_space<vmem>>, vector<1x4x240xf32>
    %17 = vector.shape_cast %16 : vector<1x4x240xf32> to vector<4x240xf32>
    %c0_13 = arith.constant 0 : index
    %c0_14 = arith.constant 0 : index
    %c272 = arith.constant 272 : index
    %18 = vector.load %arg4[%c0_13, %c0_14, %c272] : memref<1x4x2304xf32, #tpu.memory_space<vmem>>, vector<1x4x240xf32>
    %19 = vector.shape_cast %18 : vector<1x4x240xf32> to vector<4x240xf32>
    %20 = vector.shape_cast %17 : vector<4x240xf32> to vector<1x4x240xf32>
    tpu.vector_store %arg4[%c0_13, %c0_14, %c272], %20 {strides = array<i32>} : memref<1x4x2304xf32, #tpu.memory_space<vmem>>, vector<1x4x240xf32>,
    %cst_15 = arith.constant 0.000000e+00 : f32
    %21 = vector.broadcast %cst_15 : f32 to vector<4x16xf32>
    %c0_16 = arith.constant 0 : index
    %c0_17 = arith.constant 0 : index
    %c256 = arith.constant 256 : index
    %22 = vector.load %arg4[%c0_16, %c0_17, %c256] : memref<1x4x2304xf32, #tpu.memory_space<vmem>>, vector<1x4x16xf32>
    %23 = vector.shape_cast %22 : vector<1x4x16xf32> to vector<4x16xf32>
    %24 = vector.shape_cast %21 : vector<4x16xf32> to vector<1x4x16xf32>
    tpu.vector_store %arg4[%c0_16, %c0_17, %c256], %24 {strides = array<i32>} : memref<1x4x2304xf32, #tpu.memory_space<vmem>>, vector<1x4x16xf32>,
    %c0_18 = arith.constant 0 : index
    %c0_19 = arith.constant 0 : index
    %c0_20 = arith.constant 0 : index
    %25 = vector.load %arg3[%c0_18, %c0_19, %c0_20] : memref<1x4x256xf32, #tpu.memory_space<vmem>>, vector<1x4x241xf32>
    %26 = vector.shape_cast %25 : vector<1x4x241xf32> to vector<4x241xf32>
    %c0_21 = arith.constant 0 : index
    %c15 = arith.constant 15 : index
    %27 = vector.load %arg2[%c0_21, %c15] : memref<1x256xi32, #tpu.memory_space<vmem>>, vector<1x241xi32>
    %c15_i32 = arith.constant 15 : i32
    %28 = vector.broadcast %c15_i32 : i32 to vector<1x241xi32>
    %29 = arith.cmpi slt, %27, %28 : vector<1x241xi32>
    %cst_22 = arith.constant 0.000000e+00 : f32
    %30 = vector.shape_cast %29 : vector<1x241xi1> to vector<1x241xi1>
    %31 = vector.broadcast %30 : vector<1x241xi1> to vector<4x241xi1>
    %32 = vector.broadcast %cst_22 : f32 to vector<4x241xf32>
    %33 = arith.select %31, %26, %32 : vector<4x241xi1>, vector<4x241xf32>
    %c0_23 = arith.constant 0 : index
    %c0_24 = arith.constant 0 : index
    %c527 = arith.constant 527 : index
    %34 = vector.load %arg4[%c0_23, %c0_24, %c527] : memref<1x4x2304xf32, #tpu.memory_space<vmem>>, vector<1x4x241xf32>
    %35 = vector.shape_cast %34 : vector<1x4x241xf32> to vector<4x241xf32>
    %36 = vector.shape_cast %33 : vector<4x241xf32> to vector<1x4x241xf32>
    tpu.vector_store %arg4[%c0_23, %c0_24, %c527], %36 {strides = array<i32>} : memref<1x4x2304xf32, #tpu.memory_space<vmem>>, vector<1x4x241xf32>,
    %cst_25 = arith.constant 0.000000e+00 : f32
    %37 = vector.broadcast %cst_25 : f32 to vector<4x15xf32>
    %c0_26 = arith.constant 0 : index
    %c0_27 = arith.constant 0 : index
    %c512 = arith.constant 512 : index
    %38 = vector.load %arg4[%c0_26, %c0_27, %c512] : memref<1x4x2304xf32, #tpu.memory_space<vmem>>, vector<1x4x15xf32>
    %39 = vector.shape_cast %38 : vector<1x4x15xf32> to vector<4x15xf32>
    %40 = vector.shape_cast %37 : vector<4x15xf32> to vector<1x4x15xf32>
    tpu.vector_store %arg4[%c0_26, %c0_27, %c512], %40 {strides = array<i32>} : memref<1x4x2304xf32, #tpu.memory_space<vmem>>, vector<1x4x15xf32>,
    %c0_28 = arith.constant 0 : index
    %c0_29 = arith.constant 0 : index
    %c0_30 = arith.constant 0 : index
    %41 = vector.load %arg3[%c0_28, %c0_29, %c0_30] : memref<1x4x256xf32, #tpu.memory_space<vmem>>, vector<1x4x255xf32>
    %42 = vector.shape_cast %41 : vector<1x4x255xf32> to vector<4x255xf32>
    %c0_31 = arith.constant 0 : index
    %c1 = arith.constant 1 : index
    %43 = vector.load %arg2[%c0_31, %c1] : memref<1x256xi32, #tpu.memory_space<vmem>>, vector<1x255xi32>
    %c1_i32_32 = arith.constant 1 : i32
    %44 = vector.broadcast %c1_i32_32 : i32 to vector<1x255xi32>
    %45 = arith.cmpi sge, %43, %44 : vector<1x255xi32>
    %cst_33 = arith.constant 0.000000e+00 : f32
    %46 = vector.shape_cast %45 : vector<1x255xi1> to vector<1x255xi1>
    %47 = vector.broadcast %46 : vector<1x255xi1> to vector<4x255xi1>
    %48 = vector.broadcast %cst_33 : f32 to vector<4x255xf32>
    %49 = arith.select %47, %42, %48 : vector<4x255xi1>, vector<4x255xf32>
    %c0_34 = arith.constant 0 : index
    %c0_35 = arith.constant 0 : index
    %c769 = arith.constant 769 : index
    %50 = vector.load %arg4[%c0_34, %c0_35, %c769] : memref<1x4x2304xf32, #tpu.memory_space<vmem>>, vector<1x4x255xf32>
    %51 = vector.shape_cast %50 : vector<1x4x255xf32> to vector<4x255xf32>
    %52 = vector.shape_cast %49 : vector<4x255xf32> to vector<1x4x255xf32>
    tpu.vector_store %arg4[%c0_34, %c0_35, %c769], %52 {strides = array<i32>} : memref<1x4x2304xf32, #tpu.memory_space<vmem>>, vector<1x4x255xf32>,
    %cst_36 = arith.constant 0.000000e+00 : f32
    %53 = vector.broadcast %cst_36 : f32 to vector<4x1xf32>
    %c0_37 = arith.constant 0 : index
    %c0_38 = arith.constant 0 : index
    %c768 = arith.constant 768 : index
    %54 = vector.load %arg4[%c0_37, %c0_38, %c768] : memref<1x4x2304xf32, #tpu.memory_space<vmem>>, vector<1x4x1xf32>
    %55 = vector.shape_cast %54 : vector<1x4x1xf32> to vector<4x1xf32>
    %56 = vector.shape_cast %53 : vector<4x1xf32> to vector<1x4x1xf32>
    tpu.vector_store %arg4[%c0_37, %c0_38, %c768], %56 {strides = array<i32>} : memref<1x4x2304xf32, #tpu.memory_space<vmem>>, vector<1x4x1xf32>,
    %c0_39 = arith.constant 0 : index
    %c0_40 = arith.constant 0 : index
    %c0_41 = arith.constant 0 : index
    %57 = vector.load %arg3[%c0_39, %c0_40, %c0_41] : memref<1x4x256xf32, #tpu.memory_space<vmem>>, vector<1x4x256xf32>
    %58 = vector.shape_cast %57 : vector<1x4x256xf32> to vector<4x256xf32>
    %c0_42 = arith.constant 0 : index
    %c0_43 = arith.constant 0 : index
    %c1024 = arith.constant 1024 : index
    %59 = vector.load %arg4[%c0_42, %c0_43, %c1024] : memref<1x4x2304xf32, #tpu.memory_space<vmem>>, vector<1x4x256xf32>
    %60 = vector.shape_cast %59 : vector<1x4x256xf32> to vector<4x256xf32>
    %61 = vector.shape_cast %58 : vector<4x256xf32> to vector<1x4x256xf32>
    tpu.vector_store %arg4[%c0_42, %c0_43, %c1024], %61 {strides = array<i32>} : memref<1x4x2304xf32, #tpu.memory_space<vmem>>, vector<1x4x256xf32>,
    %c0_44 = arith.constant 0 : index
    %c0_45 = arith.constant 0 : index
    %c1_46 = arith.constant 1 : index
    %62 = vector.load %arg3[%c0_44, %c0_45, %c1_46] : memref<1x4x256xf32, #tpu.memory_space<vmem>>, vector<1x4x255xf32>
    %63 = vector.shape_cast %62 : vector<1x4x255xf32> to vector<4x255xf32>
    %c0_47 = arith.constant 0 : index
    %c0_48 = arith.constant 0 : index
    %64 = vector.load %arg2[%c0_47, %c0_48] : memref<1x256xi32, #tpu.memory_space<vmem>>, vector<1x255xi32>
    %c15_i32_49 = arith.constant 15 : i32
    %65 = vector.broadcast %c15_i32_49 : i32 to vector<1x255xi32>
    %66 = arith.cmpi slt, %64, %65 : vector<1x255xi32>
    %cst_50 = arith.constant 0.000000e+00 : f32
    %67 = vector.shape_cast %66 : vector<1x255xi1> to vector<1x255xi1>
    %68 = vector.broadcast %67 : vector<1x255xi1> to vector<4x255xi1>
    %69 = vector.broadcast %cst_50 : f32 to vector<4x255xf32>
    %70 = arith.select %68, %63, %69 : vector<4x255xi1>, vector<4x255xf32>
    %c0_51 = arith.constant 0 : index
    %c0_52 = arith.constant 0 : index
    %c1280 = arith.constant 1280 : index
    %71 = vector.load %arg4[%c0_51, %c0_52, %c1280] : memref<1x4x2304xf32, #tpu.memory_space<vmem>>, vector<1x4x255xf32>
    %72 = vector.shape_cast %71 : vector<1x4x255xf32> to vector<4x255xf32>
    %73 = vector.shape_cast %70 : vector<4x255xf32> to vector<1x4x255xf32>
    tpu.vector_store %arg4[%c0_51, %c0_52, %c1280], %73 {strides = array<i32>} : memref<1x4x2304xf32, #tpu.memory_space<vmem>>, vector<1x4x255xf32>,
    %cst_53 = arith.constant 0.000000e+00 : f32
    %74 = vector.broadcast %cst_53 : f32 to vector<4x1xf32>
    %c0_54 = arith.constant 0 : index
    %c0_55 = arith.constant 0 : index
    %c1535 = arith.constant 1535 : index
    %75 = vector.load %arg4[%c0_54, %c0_55, %c1535] : memref<1x4x2304xf32, #tpu.memory_space<vmem>>, vector<1x4x1xf32>
    %76 = vector.shape_cast %75 : vector<1x4x1xf32> to vector<4x1xf32>
    %77 = vector.shape_cast %74 : vector<4x1xf32> to vector<1x4x1xf32>
    tpu.vector_store %arg4[%c0_54, %c0_55, %c1535], %77 {strides = array<i32>} : memref<1x4x2304xf32, #tpu.memory_space<vmem>>, vector<1x4x1xf32>,
    %c0_56 = arith.constant 0 : index
    %c0_57 = arith.constant 0 : index
    %c15_58 = arith.constant 15 : index
    %78 = vector.load %arg3[%c0_56, %c0_57, %c15_58] : memref<1x4x256xf32, #tpu.memory_space<vmem>>, vector<1x4x241xf32>
    %79 = vector.shape_cast %78 : vector<1x4x241xf32> to vector<4x241xf32>
    %c0_59 = arith.constant 0 : index
    %c0_60 = arith.constant 0 : index
    %80 = vector.load %arg2[%c0_59, %c0_60] : memref<1x256xi32, #tpu.memory_space<vmem>>, vector<1x241xi32>
    %c1_i32_61 = arith.constant 1 : i32
    %81 = vector.broadcast %c1_i32_61 : i32 to vector<1x241xi32>
    %82 = arith.cmpi sge, %80, %81 : vector<1x241xi32>
    %cst_62 = arith.constant 0.000000e+00 : f32
    %83 = vector.shape_cast %82 : vector<1x241xi1> to vector<1x241xi1>
    %84 = vector.broadcast %83 : vector<1x241xi1> to vector<4x241xi1>
    %85 = vector.broadcast %cst_62 : f32 to vector<4x241xf32>
    %86 = arith.select %84, %79, %85 : vector<4x241xi1>, vector<4x241xf32>
    %c0_63 = arith.constant 0 : index
    %c0_64 = arith.constant 0 : index
    %c1536 = arith.constant 1536 : index
    %87 = vector.load %arg4[%c0_63, %c0_64, %c1536] : memref<1x4x2304xf32, #tpu.memory_space<vmem>>, vector<1x4x241xf32>
    %88 = vector.shape_cast %87 : vector<1x4x241xf32> to vector<4x241xf32>
    %89 = vector.shape_cast %86 : vector<4x241xf32> to vector<1x4x241xf32>
    tpu.vector_store %arg4[%c0_63, %c0_64, %c1536], %89 {strides = array<i32>} : memref<1x4x2304xf32, #tpu.memory_space<vmem>>, vector<1x4x241xf32>,
    %cst_65 = arith.constant 0.000000e+00 : f32
    %90 = vector.broadcast %cst_65 : f32 to vector<4x15xf32>
    %c0_66 = arith.constant 0 : index
    %c0_67 = arith.constant 0 : index
    %c1777 = arith.constant 1777 : index
    %91 = vector.load %arg4[%c0_66, %c0_67, %c1777] : memref<1x4x2304xf32, #tpu.memory_space<vmem>>, vector<1x4x15xf32>
    %92 = vector.shape_cast %91 : vector<1x4x15xf32> to vector<4x15xf32>
    %93 = vector.shape_cast %90 : vector<4x15xf32> to vector<1x4x15xf32>
    tpu.vector_store %arg4[%c0_66, %c0_67, %c1777], %93 {strides = array<i32>} : memref<1x4x2304xf32, #tpu.memory_space<vmem>>, vector<1x4x15xf32>,
    %c0_68 = arith.constant 0 : index
    %c0_69 = arith.constant 0 : index
    %c16 = arith.constant 16 : index
    %94 = vector.load %arg3[%c0_68, %c0_69, %c16] : memref<1x4x256xf32, #tpu.memory_space<vmem>>, vector<1x4x240xf32>
    %95 = vector.shape_cast %94 : vector<1x4x240xf32> to vector<4x240xf32>
    %c0_70 = arith.constant 0 : index
    %c0_71 = arith.constant 0 : index
    %c1792 = arith.constant 1792 : index
    %96 = vector.load %arg4[%c0_70, %c0_71, %c1792] : memref<1x4x2304xf32, #tpu.memory_space<vmem>>, vector<1x4x240xf32>
    %97 = vector.shape_cast %96 : vector<1x4x240xf32> to vector<4x240xf32>
    %98 = vector.shape_cast %95 : vector<4x240xf32> to vector<1x4x240xf32>
    tpu.vector_store %arg4[%c0_70, %c0_71, %c1792], %98 {strides = array<i32>} : memref<1x4x2304xf32, #tpu.memory_space<vmem>>, vector<1x4x240xf32>,
    %cst_72 = arith.constant 0.000000e+00 : f32
    %99 = vector.broadcast %cst_72 : f32 to vector<4x16xf32>
    %c0_73 = arith.constant 0 : index
    %c0_74 = arith.constant 0 : index
    %c2032 = arith.constant 2032 : index
    %100 = vector.load %arg4[%c0_73, %c0_74, %c2032] : memref<1x4x2304xf32, #tpu.memory_space<vmem>>, vector<1x4x16xf32>
    %101 = vector.shape_cast %100 : vector<1x4x16xf32> to vector<4x16xf32>
    %102 = vector.shape_cast %99 : vector<4x16xf32> to vector<1x4x16xf32>
    tpu.vector_store %arg4[%c0_73, %c0_74, %c2032], %102 {strides = array<i32>} : memref<1x4x2304xf32, #tpu.memory_space<vmem>>, vector<1x4x16xf32>,
    %c0_75 = arith.constant 0 : index
    %c0_76 = arith.constant 0 : index
    %c17_77 = arith.constant 17 : index
    %103 = vector.load %arg3[%c0_75, %c0_76, %c17_77] : memref<1x4x256xf32, #tpu.memory_space<vmem>>, vector<1x4x239xf32>
    %104 = vector.shape_cast %103 : vector<1x4x239xf32> to vector<4x239xf32>
    %c0_78 = arith.constant 0 : index
    %c0_79 = arith.constant 0 : index
    %105 = vector.load %arg2[%c0_78, %c0_79] : memref<1x256xi32, #tpu.memory_space<vmem>>, vector<1x239xi32>
    %c15_i32_80 = arith.constant 15 : i32
    %106 = vector.broadcast %c15_i32_80 : i32 to vector<1x239xi32>
    %107 = arith.cmpi slt, %105, %106 : vector<1x239xi32>
    %cst_81 = arith.constant 0.000000e+00 : f32
    %108 = vector.shape_cast %107 : vector<1x239xi1> to vector<1x239xi1>
    %109 = vector.broadcast %108 : vector<1x239xi1> to vector<4x239xi1>
    %110 = vector.broadcast %cst_81 : f32 to vector<4x239xf32>
    %111 = arith.select %109, %104, %110 : vector<4x239xi1>, vector<4x239xf32>
    %c0_82 = arith.constant 0 : index
    %c0_83 = arith.constant 0 : index
    %c2048 = arith.constant 2048 : index
    %112 = vector.load %arg4[%c0_82, %c0_83, %c2048] : memref<1x4x2304xf32, #tpu.memory_space<vmem>>, vector<1x4x239xf32>
    %113 = vector.shape_cast %112 : vector<1x4x239xf32> to vector<4x239xf32>
    %114 = vector.shape_cast %111 : vector<4x239xf32> to vector<1x4x239xf32>
    tpu.vector_store %arg4[%c0_82, %c0_83, %c2048], %114 {strides = array<i32>} : memref<1x4x2304xf32, #tpu.memory_space<vmem>>, vector<1x4x239xf32>,
    %cst_84 = arith.constant 0.000000e+00 : f32
    %115 = vector.broadcast %cst_84 : f32 to vector<4x17xf32>
    %c0_85 = arith.constant 0 : index
    %c0_86 = arith.constant 0 : index
    %c2287 = arith.constant 2287 : index
    %116 = vector.load %arg4[%c0_85, %c0_86, %c2287] : memref<1x4x2304xf32, #tpu.memory_space<vmem>>, vector<1x4x17xf32>
    %117 = vector.shape_cast %116 : vector<1x4x17xf32> to vector<4x17xf32>
    %118 = vector.shape_cast %115 : vector<4x17xf32> to vector<1x4x17xf32>
    tpu.vector_store %arg4[%c0_85, %c0_86, %c2287], %118 {strides = array<i32>} : memref<1x4x2304xf32, #tpu.memory_space<vmem>>, vector<1x4x17xf32>,
    return
  }
  func.func @transform_0(%arg0: i32, %arg1: i32) -> (i32, i32) {
    %c0_i32 = arith.constant 0 : i32
    %c0_i32_0 = arith.constant 0 : i32
    %c0_i32_1 = arith.constant 0 : i32
    return %c0_i32, %c0_i32_0 : i32, i32
  }
  func.func @transform_1(%arg0: i32, %arg1: i32) -> (i32, i32, i32) {
    %c0_i32 = arith.constant 0 : i32
    %c0_i32_0 = arith.constant 0 : i32
    return %arg0, %arg1, %c0_i32 : i32, i32, i32
  }
  func.func @transform_2(%arg0: i32, %arg1: i32) -> (i32, i32, i32) {
    %c0_i32 = arith.constant 0 : i32
    %c0_i32_0 = arith.constant 0 : i32
    return %arg0, %arg1, %c0_i32 : i32, i32, i32
  }
}

</mosaic_0001>

<bundles_post_ra>
// kernel: tpu_custom_call.1
= control target key start
LH: loop header
LB: loop body
LE: loop exit
PB: predicated region body
PF: predicated region fallthrough
CT: control target
= control target key end

     0   :  { %7 = vsyncpa [#allocation3], 0  ;;  %s1180_s0 = inlined_call_operand.hbm [shape: s32[1,256], index: 0, kind: input, shape index: {}]   ;;  %s1181_s1 = inlined_call_operand.hbm [shape: f32[2,4,256], index: 1, kind: input, shape index: {}]   ;;  %s1182_s2 = inlined_call_operand.hbm [shape: f32[2,4,2304], index: 2, kind: output, shape index: {}]  }
   0x1   :  { %8 = vsyncpa [#allocation6], 0 }
   0x2   :  { %10 = vsyncpa [#allocation6 + $0x1], 0 }
   0x3   :  { %11 = vsyncpa [#allocation4], 0 }
   0x4   :  { %13 = vsyncpa [#allocation4 + $0x1], 0  ;;  %s819_s9 = smov 0   ;;  %s821_s10 = smov 0  }
   0x5   :  { %s823_s11 = smov 0   ;;  %s825_s12 = smov 0  }
   0x6   :  { %s827_s13 = smov 0   ;;  %s829_s14 = smov 0  }
   0x7 LB: > { %s544_s15 = sadd.s32 4294967295, %s789_s14   ;;  %s545_s16 = sadd.s32 4294967294, %s789_s14   ;;  %s789_s14 = sphi %s829_s14, %s19_s14   ;;  %s785_s13 = sphi %s827_s13, %s1235_s13   ;;  %s781_s12 = sphi %s825_s12, %s1234_s12   ;;  %s777_s11 = sphi %s823_s11, %s1233_s11   ;;  %s773_s10 = sphi %s821_s10, %s1232_s10   ;;  %s769_s9 = sphi %s819_s9, %s1231_s9  }
   0x8   : > { %p74_p0 = scmp.ne.s32.totalorder %s773_s10, %s769_s9  ;;  %p853_p1 = scmp.eq.s32.totalorder %s544_s15, 0 }
   0x9   : > { %p857_p2 = scmp.eq.s32.totalorder %s544_s15, 1  ;;  %p106_p3 = scmp.eq.s32.totalorder %s545_s16, 1 }
   0xa   : > { %s1187_s17 = scalar_select %p853_p1, 1, 0 }
   0xb   : > { %s1188_s18 = scalar_select %p857_p2, 1, 0 }
   0xc   : > { %p863_p4 = por %p853_p1, %p74_p0  ;;  %p546_p5 = scmp.ge.s32.totalorder %s789_s14, 1 }
   0xd   : > { %p868_p6 = por %p106_p3, %p74_p0  ;;  %p113_p7 = scmp.lt.s32.totalorder %s789_s14, 3 }
   0xe   : > { %s1189_s19 = scalar_select %p863_p4, 1, 0 }
   0xf   : > { %s1190_s20 = scalar_select %p868_p6, 1, 0 }
  0x10   : > { %p873_p8 = pnand %p546_p5, %p113_p7  ;;  %s791_s22 = smov [#allocation2]  }
  0x11   : > { %s126_s23 = sshll.u32 %s791_s22, 4  ;;  %s31_s25 = sadd.s32 1, %s785_s13  ;;  %s127_s23 = int_to_ptr.vmem [resolvable:$true] %s126_s23 }
  0x12   : > { %s1191_s21 = scalar_select %p873_p8, 1, 0 }
  0x13   : > { %p569_p10 = pneg %p873_p8  ;;  %s61_s26 = sadd.s32 1, %s777_s11 }
  0x14   : > { %p888_p12 = scmp.ge.s32.totalorder %s31_s25, 2  ;;  %s645_s30 = scalar_lea.hbm %s1180_s0, 32 }
  0x15   : > { %p882_p11 = pnand %p569_p10, %p853_p1  ;;  %p646_p13 = scmp.ne.s32.totalorder %s1180_s0, %s645_s30 }
  0x16   : > { %s1193_s27 = scalar_select %p888_p12, 1, 0 }
  0x17   : > { %p647_p0 = pneg %p882_p11  ;;  %p652_p7 = scmp.lt.u32.totalorder %s645_s30, %s1180_s0 }
  0x19   : > { %p648_p3 = pnand %p647_p0, %p646_p13 }
  0x1b   : > { %p649_p5 = pneg %p648_p3 }
  0x1d   : > { %p654_p10 = pnand %p652_p7, %p649_p5 }
  0x1f   : > { %657 = shalt.err (!%p654_p10)
}
  0x20   : > { %s658_s7 = scalar_lea.vmem %s127_s23, 32  ;;  %p666_p1 = scmp.lt.s32.totalorder %s127_s23, %s127_s23 }
  0x21   : > { %p659_p9 = scmp.ne.s32.totalorder %s127_s23, %s658_s7  ;;  %p667_p8 = scmp.lt.s32.totalorder %s658_s7, %s658_s7 }
  0x23   : > { %p661_p6 = pnand %p659_p9, %p647_p0  ;;  %p668_p2 = por %p667_p8, %p666_p1 }
  0x25   : > { %p662_p4 = pneg %p661_p6 }
  0x27   : > { %p669_p12 = pnand %p668_p2, %p662_p4 }
  0x29   : > { %672 = shalt.err (!%p669_p12)
}
  0x2a   : > { %572 = dma.hbm_to_vmem [thread:$0]  (!%p882_p11), %s1180_s0, 32, %s127_s23, [#allocation3]  }
  0x2b   : > { %p1194_p1 = scmp.ne.s32.totalorder %s1193_s27, 0  ;;  %p68_p2 = scmp.ne.s32.totalorder %s777_s11, %s773_s10 }
  0x2c   : > { %p69_p4 = scmp.eq.s32.totalorder %s789_s14, 0  ;;  %p582_p6 = scmp.lt.s32.totalorder %s789_s14, 2 }
  0x2d   : > { %s1237_s25 = smov (%p1194_p1, %s31_s25), 0  ;;  %p1195_p12 = scmp.ne.s32.totalorder %s1188_s18, 0 }
  0x2e   : > { %s56_s16 = ssub.s32 %s785_s13, %s1237_s25  ;;  %p70_p9 = por %p69_p4, %p68_p2 }
  0x2f   : > { %p59_p8 = scmp.eq.s32.totalorder %s56_s16, 0  ;;  %p920_p13 = por %p1195_p12, %p68_p2 }
  0x30   : > { %s137_s24 = sand.u32 1, %s777_s11   ;;  %s558_s27 = sshll.u32 %s785_s13, 7 }
  0x31   : > { %s928_s28 = scalar_select %p59_p8, %s777_s11, %s61_s26  }
  0x32   : > { %s549_s23 = sshll.u32 %s137_s24, 3  ;;  %s934_s3 = scalar_lea.hbm %s1181_s1, %s558_s27 }
  0x33   : > { %s141_s18 = scalar_lea.vmem [#allocation5], %s549_s23  ;;  %p938_p11 = pnand %p582_p6, %p70_p9 }
  0x34   : > { %s151_s4 = sshll.u32 %s141_s18, 4  ;;  %s138_s26 = scalar_lea.sflag [#allocation6], %s137_s24  ;;  %s936_s4 = int_to_ptr.vmem [resolvable:$true] %s151_s4 }
  0x35   : > { %s673_s6 = scalar_lea.hbm %s934_s3, 128  ;;  %p675_p3 = pneg %p938_p11 }
  0x36   : > { %p674_p0 = scmp.ne.s32.totalorder %s934_s3, %s673_s6  ;;  %s678_s15 = scalar_lea.hbm %s1181_s1, 256 }
  0x37   : > { %p679_p10 = scmp.lt.u32.totalorder %s934_s3, %s1181_s1  ;;  %p680_p1 = scmp.lt.u32.totalorder %s678_s15, %s673_s6 }
  0x38   : > { %p676_p5 = pnand %p675_p3, %p674_p0  ;;  %p682_p4 = scmp.lt.u32.totalorder %s673_s6, %s934_s3 }
  0x39   : > { %p681_p2 = por %p680_p1, %p679_p10 }
  0x3a   : > { %p677_p7 = pneg %p676_p5 }
  0x3b   : > { %p683_p6 = por %p682_p4, %p681_p2 }
  0x3d   : > { %p684_p8 = pnand %p683_p6, %p677_p7 }
  0x3f   : > { %687 = shalt.err (!%p684_p8)
}
  0x40   : > { %s688_s24 = scalar_lea.vmem %s936_s4, 128  ;;  %s792_s27 = smov [#allocation5]  }
  0x41   : > { %p689_p9 = scmp.ne.s32.totalorder %s936_s4, %s688_s24  ;;  %s693_s29 = sshll.u32 %s792_s27, 4  ;;  %s694_s29 = int_to_ptr.vmem [resolvable:$false] %s693_s29 }
  0x42   : > { %s695_s30 = scalar_lea.vmem %s694_s29, 256  ;;  %p696_p5 = scmp.lt.s32.totalorder %s936_s4, %s694_s29 }
  0x43   : > { %p691_p12 = pnand %p689_p9, %p675_p3  ;;  %p697_p10 = scmp.lt.s32.totalorder %s695_s30, %s688_s24 }
  0x45   : > { %p692_p0 = pneg %p691_p12  ;;  %p698_p1 = por %p697_p10, %p696_p5 }
  0x47   : > { %p699_p2 = pnand %p698_p1, %p692_p0 }
  0x49   : > { %702 = shalt.err (!%p699_p2)
}
  0x4a   : > { %576 = dma.hbm_to_vmem [thread:$0]  (!%p938_p11), %s934_s3, 128, %s936_s4, %s138_s26  }
  0x4b   : > { %p1198_p7 = scmp.ne.s32.totalorder %s1191_s21, 0 }
  0x4c   : > { %p1199_p3 = scmp.ne.s32.totalorder (!%p1198_p7), %s1187_s17, 0 }
  0x4d   : > { %160 = sbr.rel (%p1198_p7) target bundleno = 249 (0xf9), region = 28 }
  0x54   : > { %756 = dma.done.wait (%p1199_p3), [#allocation3], 32  }
  0x55   : > { %758 = vsyncadd (%p1199_p3), [#allocation3], 4294967264  ;;  %s974_s18 = sand.u32 1, %s773_s10   ;;  %p1200_p4 = scmp.ne.s32.totalorder %s1189_s19, 0 }
  0x56   : > { %s554_s6 = sshll.u32 %s974_s18, 3  ;;  %s167_s5 = scalar_lea.sflag [#allocation6], %s974_s18 }
  0x57   : > { %s170_s7 = scalar_lea.vmem [#allocation5], %s554_s6 }
  0x58   : > { %760 = dma.done.wait (%p1200_p4), %s167_s5, 128  }
  0x59   : > { %762 = vsyncadd (%p1200_p4), %s167_s5, 4294967168  ;;  %s559_s21 = smul.u32 72, %s974_s18  ;;  %v240_v0 = vld [vmem:[%s170_s7] sm:$0xff]  ;;  %s793_s3 = smov 15   ;;  %v195_v2 = vlaneseq  ;;  %v241_v3 = vld [vmem:[#allocation2] sm:$0x3] }
  0x5a   : > { %256 = vrot.lane.b32.xlu1 %v240_v0, %s793_s3  ;;  %v255_v1 = vcombine.high %v240_v0, %v240_v0  ;;  %s794_s17 = smov 17   ;;  %s795_s26 = smov 1   ;;  %vm242_vm0 = vcmp.lt.s32.totalorder %v241_v3, 15  ;;  %v192_v5 = vld [vmem:[#allocation2] sm:$0x3]  ;;  %v801_v10 = vmov 0  }
  0x5b   : > { %207 = vrot.lane.b32.xlu0 %v240_v0, %s794_s17  ;;  %s983_s4 = scalar_lea.vmem [#allocation7], %s559_s21  ;;  %s796_s8 = smov 127   ;;  %v196_v4 = vshrl.u32 %v195_v2, 7  ;;  %v276_v6 = vld [vmem:[#allocation2] sm:$0x3]  ;;  %v243_v11 = vsel %vm242_vm0, 1, %v801_v10 }
  0x5c   : > { %311 = vst [vmem:[%s983_s4 + $0x20] sm:$0xff] %v240_v0  ;;  %s797_s19 = smov 113   ;;  %s798_s15 = smov 111   ;;  %v313_v9 = vld [vmem:[#allocation2] sm:$0x3]  ;;  %vm193_vm1 = vcmp.ge.s32.totalorder %v192_v5, 1 }
  0x5d   : > { %s799_s16 = smov 112   ;;  %s800_s23 = smov 16   ;;  %v986_v7 = vsub.s32 0, %v196_v4  ;;  %v988_v8 = vsub.s32 1, %v196_v4  ;;  %vm277_vm2 = vcmp.ge.s32.totalorder %v276_v6, 1  ;;  %vm314_vm3 = vcmp.lt.s32.totalorder %v313_v9, 15 }
  0x5e   : > { %258 = vrot.lane.b32.xlu1 %v255_v1, %s793_s3  ;;  %v194_v13 = vsel %vm193_vm1, 1, %v801_v10  ;;  %v278_v15 = vsel %vm277_vm2, 1, %v801_v10  ;;  %vm222_vm4 = vcmask 1047556   ;;  %vm260_vm5 = vcmask 121856   ;;  %v349_v18 = vld [vmem:[#allocation2] sm:$0x3] }
  0x5f   : > { %291 = vrot.lane.b32.xlu0 %v240_v0, %s795_s26  ;;  %v247_v12 = vrot.slane %v243_v11, %v986_v7  ;;  %v251_v14 = vrot.slane %v243_v11, %v988_v8  ;;  %vm270_vm6 = vcmask 1043576   ;;  %vm273_vm7 = vcmask 117760   ;;  %v397_v31 = vld [vmem:[#allocation2] sm:$0x3]  ;;  %s560_s24 = smul.u32 1152, %s781_s12  ;;  %s448_s27 = sshll.u32 %s983_s4, 4  ;;  %s1125_s27 = int_to_ptr.vmem [resolvable:$true] %s448_s27 }
  0x60   : > { %vm295_vm8 = vcmask 7168   ;;  %v315_v19 = vsel %vm314_vm3, 1, %v801_v10  ;;  %v198_v20 = vrot.slane %v194_v13, %v986_v7  ;;  %v282_v21 = vrot.slane %v278_v15, %v986_v7  ;;  %vm271_vm3 = vmor %vm222_vm4, %vm270_vm6  ;;  %s432_s6 = scalar_lea.sflag [#allocation4], %s974_s18  ;;  %s703_s5 = scalar_lea.vmem %s1125_s27, 1152 }
  0x61   : > { %v286_v22 = vrot.slane %v278_v15, %v988_v8  ;;  %vm211_vm9 = vcmask 138240   ;;  %vm999_vm10 = vcmp.eq.s32.totalorder %v247_v12, 1  ;;  %vm1003_vm11 = vcmp.eq.s32.totalorder %v251_v14, 1  ;;  %s1123_s30 = scalar_lea.hbm %s1182_s2, %s560_s24  ;;  %p704_p11 = scmp.ne.s32.totalorder %s1125_s27, %s703_s5 }
  0x62   : > { %293 = vrot.lane.b32.xlu1 %v255_v1, %s795_s26  ;;  %v202_v25 = vrot.slane %v194_v13, %v988_v8  ;;  %vm350_vm12 = vcmp.ge.s32.totalorder %v349_v18, 1  ;;  %vm305_vm13 = vcmask 1043464   ;;  %v323_v28 = vrot.slane %v315_v19, %v988_v8  ;;  %s803_s7 = smov [#allocation7]  }
  0x63   : > { %209 = vrot.lane.b32.xlu0 %v255_v1, %s794_s17  ;;  %v319_v30 = vrot.slane %v315_v19, %v986_v7  ;;  %vm1013_vm2 = vcmp.eq.s32.totalorder %v198_v20, 1  ;;  %v351_v35 = vsel %vm350_vm12, 1, %v801_v10  ;;  %vm1027_vm0 = vcmp.eq.s32.totalorder %v286_v22, 1  ;;  %vm1042_vm1 = vmor %vm222_vm4, %vm305_vm13  ;;  %p705_p6 = pnand %p704_p11, %p920_p13  ;;  %s707_s21 = sshll.u32 %s803_s7, 4  ;;  %s708_s21 = int_to_ptr.vmem [resolvable:$false] %s707_s21 }
  0x64   : > { %vm1035_vm6 = vcmp.eq.s32.totalorder %v323_v28, 1  ;;  %vm343_vm12 = vcmask 1039364   ;;  %vm398_vm14 = vcmp.lt.s32.totalorder %v397_v31, 15  ;;  %v359_v47 = vrot.slane %v351_v35, %v988_v8  ;;  %s709_s3 = scalar_lea.vmem %s708_s21, 2304  ;;  %p710_p9 = scmp.lt.s32.totalorder %s1125_s27, %s708_s21 }
  0x65   : > { %vm1048_vm15 = vcmp.eq.s32.totalorder %v319_v30, 1  ;;  %v802_v49 = vmov 0.0   ;;  %v355_v55 = vrot.slane %v351_v35, %v986_v7  ;;  %v399_v56 = vsel %vm398_vm14, 1, %v801_v10  ;;  %p706_p8 = pneg %p705_p6  ;;  %p711_p12 = scmp.lt.s32.totalorder %s709_s3, %s703_s5 }
  0x66   : > { %330 = vrot.lane.b32.xlu1 %v255_v1, %s796_s8  ;;  %vm1220_vm13 = vcmask 1039360   ;;  %v407_v63 = vrot.slane %v399_v56, %v988_v8 }
  0x67   : > { %328 = vrot.lane.b32.xlu0 %v240_v0, %s796_s8  ;;  %p712_p0 = por %p711_p12, %p710_p9 }
  0x69   : > { %p713_p5 = pnand %p712_p0, %p706_p8 }
  0x6a   : > { %366 = vrot.lane.b32.xlu1 %v255_v1, %s797_s19 }
  0x6b   : > { %364 = vrot.lane.b32.xlu0 %v240_v0, %s797_s19 }
  0x6e   : > { %414 = vrot.lane.b32.xlu1 %v255_v1, %s798_s15  ;;  %v403_v1 = vrot.slane %v399_v56, %v986_v7 }
  0x6f   : > { %412 = vrot.lane.b32.xlu0 %v240_v0, %s798_s15 }
  0x72   : > { %385 = vrot.lane.b32.xlu1 %v240_v0, %s799_s16 }
  0x73   : > { %229 = vrot.lane.b32.xlu0 %v240_v0, %s800_s23 }
  0xcc   : > { %v257_v16 = vpop.permute.xlu1 %256 }
  0xcd   : > { %v208_v17 = vpop.permute.xlu0 %207  ;;  %v264_v32 = vsel %vm999_vm10, %v257_v16, 0.0  ;;  %vm1031_vm10 = vcmp.eq.s32.totalorder %v202_v25, 1 }
  0xce   : > { %v215_v48 = vsel %vm1013_vm2, %v208_v17, 0.0  ;;  %vm1222_vm2 = vcmask 134144  }
  0xd0   : > { %v259_v26 = vpop.permute.xlu1 %258 }
  0xd1   : > { %v292_v27 = vpop.permute.xlu0 %291  ;;  %v261_v29 = vsel %vm260_vm5, %v257_v16, %v259_v26  ;;  %vm1023_vm5 = vcmp.eq.s32.totalorder %v282_v21, 1 }
  0xd2   : > { %v265_v34 = vsel %vm1003_vm11, %v261_v29, 0.0  ;;  %vm342_vm11 = vcmask 1043456   ;;  %v299_v50 = vsel %vm1023_vm5, %v292_v27, 0.0  ;;  %vm360_vm5 = vcmp.eq.s32.totalorder %v355_v55, 1 }
  0xd3   : > { %v268_v36 = vcombine.low %v264_v32, %v265_v34  ;;  %vm344_vm14 = vmor %vm343_vm12, %vm342_vm11  ;;  %vm416_vm12 = vcmask 908288  }
  0xd4   : > { %v294_v40 = vpop.permute.xlu1 %293 }
  0xd5   : > { %v210_v41 = vpop.permute.xlu0 %209  ;;  %272 = vst.msk [vmem:[%s983_s4 + $0x10] sm:$0xff] %vm271_vm3, %v268_v36  ;;  %v296_v44 = vsel %vm295_vm8, %v292_v27, %v294_v40  ;;  %vm1219_vm8 = vcmask 1043592   ;;  %vm368_vm3 = vcmask 924672  }
  0xd6   : > { %v212_v45 = vsel %vm211_vm9, %v208_v17, %v210_v41  ;;  %274 = vst.msk [vmem:[%s983_s4 + $0x10] sm:$0xf] %vm273_vm7, %v802_v49  ;;  %v300_v51 = vsel %vm1027_vm0, %v296_v44, 0.0  ;;  %vm223_vm9 = vmor %vm222_vm4, %vm1219_vm8  ;;  %vm346_vm7 = vcmask 1044472   ;;  %vm1221_vm0 = vcmask 3072  }
  0xd7   : > { %v216_v52 = vsel %vm1031_vm10, %v212_v45, 0.0  ;;  %v303_v53 = vcombine.low %v299_v50, %v300_v51  ;;  %vm378_vm10 = vcmask 924676   ;;  %vm381_vm8 = vcmask 1044360  }
  0xd8   : > { %v219_v54 = vcombine.low %v215_v48, %v216_v52  ;;  %v331_v57 = vpop.permute.xlu1 %330 }
  0xd9   : > { %v329_v58 = vpop.permute.xlu0 %328  ;;  %307 = vst.msk [vmem:[%s983_s4 + $0x18] sm:$0xff] %vm1042_vm1, %v303_v53  ;;  %v337_v59 = vsel %vm1035_vm6, %v331_v57, 0.0  ;;  %vm1086_vm1 = vcmp.eq.s32.totalorder %v359_v47, 1  ;;  %vm1099_vm6 = vcmp.eq.s32.totalorder %v407_v63, 1 }
  0xda   : > { %224 = vst.msk [vmem:[%s983_s4] sm:$0xff] %vm223_vm9, %v219_v54  ;;  %v333_v60 = vsel %vm1220_vm13, %v329_v58, %v331_v57  ;;  %vm408_vm9 = vcmp.eq.s32.totalorder %v403_v1, 1  ;;  %vm426_vm13 = vcmask 908292  }
  0xdb   : > { %309 = vst.msk [vmem:[%s983_s4 + $0x18] sm:$0xf] %vm1221_vm0, %v802_v49  ;;  %v336_v61 = vsel %vm1048_vm15, %v333_v60, 0.0  ;;  %vm379_vm15 = vmor %vm378_vm10, %vm342_vm11 }
  0xdc   : > { %226 = vst.msk [vmem:[%s983_s4] sm:$0xf] %vm1222_vm2, %v802_v49  ;;  %v340_v0 = vcombine.low %v336_v61, %v337_v59  ;;  %v367_v2 = vpop.permute.xlu1 %366  ;;  %vm427_vm0 = vmor %vm426_vm13, %vm342_vm11  ;;  %vm235_vm2 = vcmask 1043584  }
  0xdd   : > { %v365_v3 = vpop.permute.xlu0 %364  ;;  %v373_v4 = vsel %vm1086_vm1, %v367_v2, 0.0  ;;  %vm388_vm1 = vcmask 916480   ;;  %vm236_vm10 = vmor %vm222_vm4, %vm235_vm2 }
  0xde   : > { %345 = vst.msk [vmem:[%s983_s4 + $0x28] sm:$0xff] %vm344_vm14, %v340_v0  ;;  %v369_v5 = vsel %vm368_vm3, %v365_v3, %v367_v2  ;;  %vm429_vm14 = vcmask 1044344  }
  0xdf   : > { %347 = vst.msk [vmem:[%s983_s4 + $0x2c] sm:$0xf] %vm346_vm7, %v802_v49  ;;  %v372_v6 = vsel %vm360_vm5, %v369_v5, 0.0  ;;  %vm391_vm7 = vcmask 916484   ;;  %vm232_vm5 = vcmask 130048  }
  0xe0   : > { %v376_v7 = vcombine.low %v372_v6, %v373_v4  ;;  %v415_v9 = vpop.permute.xlu1 %414  ;;  %vm1111_vm3 = vmor %vm391_vm7, %vm342_vm11  ;;  %vm394_vm11 = vcmask 1044352  }
  0xe1   : > { %v413_v10 = vpop.permute.xlu0 %412  ;;  %v421_v11 = vsel %vm1099_vm6, %v415_v9, 0.0 }
  0xe2   : > { %380 = vst.msk [vmem:[%s983_s4 + $0x30] sm:$0xff] %vm379_vm15, %v376_v7  ;;  %v417_v12 = vsel %vm416_vm12, %v413_v10, %v415_v9  ;;  %vm238_vm15 = vcmask 125952  }
  0xe3   : > { %382 = vst.msk [vmem:[%s983_s4 + $0x34] sm:$0xf] %vm381_vm8, %v802_v49  ;;  %v420_v13 = vsel %vm408_vm9, %v417_v12, 0.0 }
  0xe4   : > { %v424_v14 = vcombine.low %v420_v13, %v421_v11  ;;  %v386_v16 = vpop.permute.xlu1 %385 }
  0xe5   : > { %v230_v17 = vpop.permute.xlu0 %229  ;;  %v387_v18 = vrot.slane %v386_v16, 4 }
  0xe6   : > { %428 = vst.msk [vmem:[%s983_s4 + $0x40] sm:$0xff] %vm427_vm0, %v424_v14  ;;  %v231_v19 = vrot.slane %v230_v17, 4 }
  0xe7   : > { %430 = vst.msk [vmem:[%s983_s4 + $0x44] sm:$0xf] %vm429_vm14, %v802_v49  ;;  %v389_v20 = vsel %vm388_vm1, %v386_v16, %v387_v18 }
  0xe8   : > { %v233_v21 = vsel %vm232_vm5, %v231_v19, %v230_v17  ;;  %393 = vst.msk [vmem:[%s983_s4 + $0x38] sm:$0xff] %vm1111_vm3, %v389_v20 }
  0xe9   : > { %237 = vst.msk [vmem:[%s983_s4 + $0x8] sm:$0xff] %vm236_vm10, %v233_v21 }
  0xea   : > { %395 = vst.msk [vmem:[%s983_s4 + $0x3c] sm:$0xf] %vm394_vm11, %v802_v49 }
  0xeb   : > { %239 = vst.msk [vmem:[%s983_s4 + $0x8] sm:$0xf] %vm238_vm15, %v802_v49 }
  0xec   : > { %716 = shalt.err (!%p713_p5)
}
  0xed   : > { %s717_s18 = scalar_lea.hbm %s1123_s30, 1152  ;;  %s721_s26 = scalar_lea.hbm %s1182_s2, 2304 }
  0xee   : > { %p718_p10 = scmp.ne.s32.totalorder %s1123_s30, %s717_s18  ;;  %p722_p7 = scmp.lt.u32.totalorder %s1123_s30, %s1182_s2 }
  0xef   : > { %p723_p3 = scmp.lt.u32.totalorder %s721_s26, %s717_s18  ;;  %p725_p11 = scmp.lt.u32.totalorder %s717_s18, %s1123_s30 }
  0xf0   : > { %p719_p1 = pnand %p718_p10, %p920_p13 }
  0xf1   : > { %p724_p4 = por %p723_p3, %p722_p7 }
  0xf2   : > { %p720_p2 = pneg %p719_p1 }
  0xf3   : > { %p726_p6 = por %p725_p11, %p724_p4 }
  0xf5   : > { %p727_p8 = pnand %p726_p6, %p720_p2 }
  0xf7   : > { %730 = shalt.err (!%p727_p8)
}
  0xf8   : > { %567 = dma.vmem_to_hbm [thread:$0]  (%p920_p13), %s1125_s27, 1152, %s1123_s30, %s432_s6  }
  0xf9 PF: > { %s460_s15 = sand.u32 1, %s769_s9   ;;  %p1229_p9 = scmp.ne.s32.totalorder %s1190_s20, 0 }
  0xfa   : > { %p1230_p12 = scmp.ge.s32.totalorder %s789_s14, 2  ;;  %s461_s16 = scalar_lea.sflag [#allocation4], %s460_s15 }
  0xfc   : > { %p578_p0 = pnand %p1230_p12, %p1229_p9 }
  0xfe   : > { %764 = dma.done.wait (!%p578_p0), %s461_s16, 1152  }
  0xff   : > { %766 = vsyncadd (!%p578_p0), %s461_s16, 4294966144  ;;  %s19_s14 = sadd.s32 1, %s789_s14   ;;  %s1231_s9 = smov %s773_s10 }
 0x100   : > { %p16_p5 = scmp.ge.s32.totalorder %s19_s14, 4   ;;  %s1232_s10 = smov %s777_s11 }
 0x101   : > { %s1233_s11 = smov %s928_s28  ;;  %s1234_s12 = smov %s785_s13 }
 0x102   : > { %s1235_s13 = smov %s1237_s25  ;;  %18 = sbr.rel (!%p16_p5) target bundleno = 7 (0x7), region = 78 }
 0x109   :  { %466 = vsyncpa [#allocation3], 1 }
 0x10a   :  { %468 = vsyncpa [#allocation3 + $0x1], 1 }
 0x10b   :  { %469 = vsyncpa [#allocation6], 1 }
 0x10c   :  { %471 = vsyncpa [#allocation6 + $0x1], 1 }
 0x10d   :  { %472 = vsyncpa [#allocation4], 1 }
 0x10e   :  { %474 = vsyncpa [#allocation4 + $0x1], 1 }

</bundles_post_ra>
